<compile_context>
chip_gen: v6e
topology: v6e:2x2x1
jax: 0.10.0
libtpu: 0.0.40
codegen_flags: <defaults>
</compile_context>

<pallas_src>
import functools
import math

import jax
import jax.numpy as jnp
from jax import lax
from jax.experimental import pallas as pl
from jax.experimental.pallas import tpu as pltpu


# ---------------------------------------------------------------------------
# Kernel 1: in_proj (qkv = x @ W_in + b_in), Q pre-scaled by 1/sqrt(d_head).
# ---------------------------------------------------------------------------
def _in_proj_kernel(x_ref, w_in_ref, b_in_ref, q_ref, k_ref, v_ref, *, d_embed, scale):
    x = x_ref[0]                                                   # (TS, D), input dtype (no upcast)
    qkv = jnp.dot(x, w_in_ref[...], preferred_element_type=jnp.float32)
    qkv = qkv + b_in_ref[...]                                      # (TS, 3D) f32 accumulation
    D = d_embed
    q_ref[0] = (qkv[:, 0:D] * scale).astype(q_ref.dtype)           # scale folded into Q once
    k_ref[0] = qkv[:, D:2 * D].astype(k_ref.dtype)
    v_ref[0] = qkv[:, 2 * D:3 * D].astype(v_ref.dtype)


def _in_proj(x, w_in, b_in, *, d_head, ts):
    B, S, D = x.shape
    scale = 1.0 / math.sqrt(d_head)
    kernel = functools.partial(_in_proj_kernel, d_embed=D, scale=scale)
    out = jax.ShapeDtypeStruct((B, S, D), x.dtype)
    itemsize = jnp.dtype(x.dtype).itemsize
    flops = 2 * B * S * D * (3 * D)
    bytes_acc = (B * S * D + D * 3 * D + 3 * D + 3 * B * S * D) * itemsize
    return pl.pallas_call(
        kernel,
        out_shape=(out, out, out),
        grid_spec=pltpu.PrefetchScalarGridSpec(
            num_scalar_prefetch=0,
            grid=(B, S // ts),
            in_specs=[
                pl.BlockSpec((1, ts, D), lambda b, s: (b, s, 0)),      # x tile
                pl.BlockSpec((D, 3 * D), lambda b, s: (0, 0)),         # W_in (grid-invariant)
                pl.BlockSpec((1, 3 * D), lambda b, s: (0, 0)),         # b_in (grid-invariant)
            ],
            out_specs=[
                pl.BlockSpec((1, ts, D), lambda b, s: (b, s, 0)),
                pl.BlockSpec((1, ts, D), lambda b, s: (b, s, 0)),
                pl.BlockSpec((1, ts, D), lambda b, s: (b, s, 0)),
            ],
        ),
        compiler_params=pltpu.CompilerParams(
            dimension_semantics=("parallel", "parallel"),
            vmem_limit_bytes=64 * 1024 * 1024),
        cost_estimate=pl.CostEstimate(flops=int(flops), transcendentals=0,
                                      bytes_accessed=int(bytes_acc)),
    )(x, w_in, b_in)


# ---------------------------------------------------------------------------
# Kernel 2: flash attention over (batch, q_tile, kv_tile) + fused out_proj.
# ---------------------------------------------------------------------------
def _flash_attn_kernel(q_ref, k_ref, v_ref, w_out_ref, b_out_ref, o_ref,
                       m_scr, l_scr, acc_scr,
                       *, n_heads, d_head, tq, tk, causal):
    qi = pl.program_id(1)
    ki = pl.program_id(2)
    last_ki = pl.num_programs(2) - 1

    @pl.when(ki == 0)
    def _init():
        m_scr[...] = jnp.full_like(m_scr, -jnp.inf)
        l_scr[...] = jnp.zeros_like(l_scr)
        acc_scr[...] = jnp.zeros_like(acc_scr)

    def _tile():
        q = q_ref[0]                      # (TQ, D) input dtype, already scaled
        k = k_ref[0]                      # (TK, D)
        v = v_ref[0]                      # (TK, D)
        if causal:
            # One shared 2-D mask for all heads (instead of (H, S, S) iotas).
            row = qi * tq + lax.broadcasted_iota(jnp.int32, (tq, tk), 0)
            col = ki * tk + lax.broadcasted_iota(jnp.int32, (tq, tk), 1)
            masked = col > row
        # Static per-head loop of 2-D matmuls; avoids (S, H, d_head) transposes.
        for h in range(n_heads):
            lo = h * d_head
            hi = lo + d_head
            q_h = q[:, lo:hi]
            k_h = k[:, lo:hi]
            v_h = v[:, lo:hi]
            # scores: (TQ, TK), f32 accumulation on the MXU, bf16/f32 operands as given.
            s = lax.dot_general(q_h, k_h, (((1,), (1,)), ((), ())),
                                preferred_element_type=jnp.float32)
            if causal:
                # Large finite negative (not -inf) so fully-masked rows never NaN.
                s = jnp.where(masked, jnp.float32(-1e30), s)
            m_prev = m_scr[:, h:h + 1]                               # (TQ, 1)
            m_new = jnp.maximum(m_prev, jnp.max(s, axis=-1, keepdims=True))
            alpha = jnp.exp(m_prev - m_new)
            p = jnp.exp(s - m_new)                                   # (TQ, TK) f32
            l_scr[:, h:h + 1] = alpha * l_scr[:, h:h + 1] + jnp.sum(p, axis=-1, keepdims=True)
            # PV matmul with probabilities cast to V dtype (bf16 path on MXU).
            pv = jnp.dot(p.astype(v_h.dtype), v_h, preferred_element_type=jnp.float32)
            acc_scr[:, lo:hi] = alpha * acc_scr[:, lo:hi] + pv       # (TQ, D) merged-head slab
            m_scr[:, h:h + 1] = m_new

    if causal:
        # Skip KV tiles that lie entirely above the diagonal for this q tile.
        @pl.when(ki * tk <= qi * tq + (tq - 1))
        def _():
            _tile()
    else:
        _tile()

    @pl.when(ki == last_ki)
    def _finalize():
        # Normalize per head (EUP approximate reciprocal), then fused out_proj
        # on the merged (TQ, D) slab -- no full (S, D) intermediate.
        for h in range(n_heads):
            lo = h * d_head
            hi = lo + d_head
            acc_scr[:, lo:hi] = acc_scr[:, lo:hi] * pl.reciprocal(
                l_scr[:, h:h + 1], approx=True)
        attn = acc_scr[...].astype(w_out_ref.dtype)
        y = jnp.dot(attn, w_out_ref[...], preferred_element_type=jnp.float32)
        y = y + b_out_ref[...]
        o_ref[0] = y.astype(o_ref.dtype)


def _flash_attention(q, k, v, w_out, b_out, *, n_heads, causal, tq, tk):
    B, S, D = q.shape
    d_head = D // n_heads
    kernel = functools.partial(_flash_attn_kernel, n_heads=n_heads, d_head=d_head,
                               tq=tq, tk=tk, causal=causal)
    itemsize = jnp.dtype(q.dtype).itemsize
    flops = 4 * B * S * S * D + 2 * B * S * D * D
    transcendentals = B * n_heads * S * S
    bytes_acc = (4 * B * S * D) * itemsize + (D * D + D) * jnp.dtype(w_out.dtype).itemsize
    # NOTE: at production sizes (e.g. D=1280) the weight blocks should additionally
    # be stored in bf16 / single-buffered to keep the grid-invariant weights small
    # relative to v7x's 64 MiB VMEM.
    return pl.pallas_call(
        kernel,
        out_shape=jax.ShapeDtypeStruct((B, S, D), q.dtype),
        grid_spec=pltpu.PrefetchScalarGridSpec(
            num_scalar_prefetch=0,
            grid=(B, S // tq, S // tk),
            in_specs=[
                pl.BlockSpec((1, tq, D), lambda b, qi, ki: (b, qi, 0)),   # Q tile
                pl.BlockSpec((1, tk, D), lambda b, qi, ki: (b, ki, 0)),   # K tile
                pl.BlockSpec((1, tk, D), lambda b, qi, ki: (b, ki, 0)),   # V tile
                pl.BlockSpec((D, D), lambda b, qi, ki: (0, 0)),           # W_out (grid-invariant)
                pl.BlockSpec((1, D), lambda b, qi, ki: (0, 0)),           # b_out (grid-invariant)
            ],
            out_specs=pl.BlockSpec((1, tq, D), lambda b, qi, ki: (b, qi, 0)),
            scratch_shapes=[
                pltpu.VMEM((tq, n_heads), jnp.float32),   # running max (per head)
                pltpu.VMEM((tq, n_heads), jnp.float32),   # running sum (per head)
                pltpu.VMEM((tq, D), jnp.float32),         # merged-head output accumulator
            ],
        ),
        compiler_params=pltpu.CompilerParams(
            dimension_semantics=("parallel", "parallel", "arbitrary"),
            vmem_limit_bytes=64 * 1024 * 1024),
        cost_estimate=pl.CostEstimate(flops=int(flops),
                                      transcendentals=int(transcendentals),
                                      bytes_accessed=int(bytes_acc)),
    )(q, k, v, w_out, b_out)


def self_attention(x, w_in, b_in, w_out, b_out, *, n_heads, causal_mask=False,
                   tq=None, tk=None, ts=None):
    """Forward pass equivalent to SelfAttention.forward(x, causal_mask)."""
    B, S, D = x.shape
    assert D % n_heads == 0
    d_head = D // n_heads
    # Default tile sizes sized for v7x's 64 MiB VMEM; clamp to S for small inputs.
    tq = (min(S, 256) if tq is None else tq)
    tk = (min(S, 512) if tk is None else tk)
    ts = (min(S, 512) if ts is None else ts)
    assert S % tq == 0 and S % tk == 0 and S % ts == 0, "seq must divide tile sizes"
    q, k, v = _in_proj(x, w_in, b_in, d_head=d_head, ts=ts)
    return _flash_attention(q, k, v, w_out, b_out, n_heads=n_heads,
                            causal=causal_mask, tq=tq, tk=tk)


# ---------------------------------------------------------------------------
# Pure-JAX reference mirroring the PyTorch forward exactly.
# ---------------------------------------------------------------------------
def _reference(x, w_in, b_in, w_out, b_out, *, n_heads, causal_mask=False):
    B, S, D = x.shape
    d_head = D // n_heads
    qkv = x @ w_in + b_in[0]
    q, k, v = jnp.split(qkv, 3, axis=-1)
    q = q.reshape(B, S, n_heads, d_head).transpose(0, 2, 1, 3)
    k = k.reshape(B, S, n_heads, d_head).transpose(0, 2, 1, 3)
    v = v.reshape(B, S, n_heads, d_head).transpose(0, 2, 1, 3)
    w = q @ jnp.swapaxes(k, -1, -2)
    if causal_mask:
        mask = jnp.triu(jnp.ones((S, S), dtype=bool), k=1)
        w = jnp.where(mask, -jnp.inf, w)
    w = w / math.sqrt(d_head)
    w = jax.nn.softmax(w, axis=-1)
    out = w @ v
    out = out.transpose(0, 2, 1, 3).reshape(B, S, D)
    return out @ w_out + b_out[0]


if __name__ == "__main__":
    def run_case(B, S, D, H, dtype, tol, **tiles):
        key = jax.random.PRNGKey(0)
        kx, k1, k2, k3, k4 = jax.random.split(key, 5)
        bound = 1.0 / math.sqrt(D)
        w_in = jax.random.uniform(k1, (D, 3 * D), jnp.float32, -bound, bound).astype(dtype)
        b_in = jax.random.uniform(k2, (1, 3 * D), jnp.float32, -bound, bound).astype(dtype)
        w_out = jax.random.uniform(k3, (D, D), jnp.float32, -bound, bound).astype(dtype)
        b_out = jax.random.uniform(k4, (1, D), jnp.float32, -bound, bound).astype(dtype)
        x = jax.random.normal(kx, (B, S, D), jnp.float32).astype(dtype)
        for causal in (False, True):
            y = self_attention(x, w_in, b_in, w_out, b_out, n_heads=H,
                               causal_mask=causal, **tiles)
            y = jax.block_until_ready(y)
            ref = _reference(x.astype(jnp.float32), w_in.astype(jnp.float32),
                             b_in.astype(jnp.float32), w_out.astype(jnp.float32),
                             b_out.astype(jnp.float32), n_heads=H, causal_mask=causal)
            assert jnp.allclose(y.astype(jnp.float32), ref, atol=tol, rtol=tol), (
                f"mismatch B={B} S={S} D={D} H={H} dtype={dtype} causal={causal}")

    # Small shape consistent with the module (single q / kv tile).
    run_case(B=2, S=8, D=32, H=4, dtype=jnp.float32, tol=2e-2)
    # Multi-tile path: exercises the online-softmax KV loop and causal tile skipping.
    run_case(B=2, S=64, D=32, H=4, dtype=jnp.float32, tol=2e-2, tq=16, tk=16)
    # bf16 operands with f32 MXU accumulation (looser tolerance as expected).
    run_case(B=2, S=8, D=32, H=4, dtype=jnp.bfloat16, tol=1e-1)

    print("KERNEL_OK")
</pallas_src>

<mosaic_0001>
module attributes {stable_mosaic.version = 11 : i64} {
  func.func @_in_proj_kernel(%arg0: i32, %arg1: i32, %arg2: memref<1x8x32xf32, #tpu.memory_space<vmem>>, %arg3: memref<32x96xf32, #tpu.memory_space<vmem>>, %arg4: memref<1x96xf32, #tpu.memory_space<vmem>>, %arg5: memref<1x8x32xf32, #tpu.memory_space<vmem>>, %arg6: memref<1x8x32xf32, #tpu.memory_space<vmem>>, %arg7: memref<1x8x32xf32, #tpu.memory_space<vmem>>) attributes {dimension_semantics = [#tpu.dimension_semantics<parallel>, #tpu.dimension_semantics<parallel>], iteration_bounds = array<i64: 2, 1>, scalar_prefetch = 0 : i64, scratch_operands = 0 : i64, tpu.core_type = #tpu.core_type<tc>, window_params = [{transform_indices = @transform_0, window_bounds = array<i64: 1, 8, 32>}, {pipeline_mode = #tpu.pipeline_mode<synchronous>, transform_indices = @transform_1, window_bounds = array<i64: 32, 96>}, {pipeline_mode = #tpu.pipeline_mode<synchronous>, transform_indices = @transform_2, window_bounds = array<i64: 1, 96>}, {transform_indices = @transform_3, window_bounds = array<i64: 1, 8, 32>}, {transform_indices = @transform_4, window_bounds = array<i64: 1, 8, 32>}, {transform_indices = @transform_5, window_bounds = array<i64: 1, 8, 32>}]} {
    %c0 = arith.constant 0 : index
    %c0_0 = arith.constant 0 : index
    %c0_1 = arith.constant 0 : index
    %0 = vector.load %arg2[%c0, %c0_0, %c0_1] : memref<1x8x32xf32, #tpu.memory_space<vmem>>, vector<1x8x32xf32>
    %1 = vector.shape_cast %0 : vector<1x8x32xf32> to vector<8x32xf32>
    %c0_2 = arith.constant 0 : index
    %c0_3 = arith.constant 0 : index
    %2 = vector.load %arg3[%c0_2, %c0_3] : memref<32x96xf32, #tpu.memory_space<vmem>>, vector<32x96xf32>
    %cst = arith.constant dense<0.000000e+00> : vector<8x96xf32>
    %3 = tpu.matmul %1, %2, %cst {dimension_numbers = #tpu.dot_dimension_numbers<[1], [0], [0], [1], [0, 0, 1, 1], [], []>} : vector<8x32xf32>, vector<32x96xf32>, vector<8x96xf32> -> vector<8x96xf32>
    %c0_4 = arith.constant 0 : index
    %c0_5 = arith.constant 0 : index
    %4 = vector.load %arg4[%c0_4, %c0_5] : memref<1x96xf32, #tpu.memory_space<vmem>>, vector<1x96xf32>
    %5 = vector.broadcast %4 : vector<1x96xf32> to vector<8x96xf32>
    %6 = arith.addf %3, %5 : vector<8x96xf32>
    %7 = vector.extract_strided_slice %6 {offsets = [0, 0], sizes = [8, 32], strides = [1, 1]} : vector<8x96xf32> to vector<8x32xf32>
    %cst_6 = arith.constant 0.353553385 : f32
    %8 = vector.broadcast %cst_6 : f32 to vector<8x32xf32>
    %9 = arith.mulf %7, %8 : vector<8x32xf32>
    %c0_7 = arith.constant 0 : index
    %c0_8 = arith.constant 0 : index
    %c0_9 = arith.constant 0 : index
    %10 = vector.load %arg5[%c0_7, %c0_8, %c0_9] : memref<1x8x32xf32, #tpu.memory_space<vmem>>, vector<1x8x32xf32>
    %11 = vector.shape_cast %10 : vector<1x8x32xf32> to vector<8x32xf32>
    %12 = vector.shape_cast %9 : vector<8x32xf32> to vector<1x8x32xf32>
    tpu.vector_store %arg5[%c0_7, %c0_8, %c0_9], %12 {strides = array<i32>} : memref<1x8x32xf32, #tpu.memory_space<vmem>>, vector<1x8x32xf32>,
    %13 = vector.extract_strided_slice %6 {offsets = [0, 32], sizes = [8, 32], strides = [1, 1]} : vector<8x96xf32> to vector<8x32xf32>
    %c0_10 = arith.constant 0 : index
    %c0_11 = arith.constant 0 : index
    %c0_12 = arith.constant 0 : index
    %14 = vector.load %arg6[%c0_10, %c0_11, %c0_12] : memref<1x8x32xf32, #tpu.memory_space<vmem>>, vector<1x8x32xf32>
    %15 = vector.shape_cast %14 : vector<1x8x32xf32> to vector<8x32xf32>
    %16 = vector.shape_cast %13 : vector<8x32xf32> to vector<1x8x32xf32>
    tpu.vector_store %arg6[%c0_10, %c0_11, %c0_12], %16 {strides = array<i32>} : memref<1x8x32xf32, #tpu.memory_space<vmem>>, vector<1x8x32xf32>,
    %17 = vector.extract_strided_slice %6 {offsets = [0, 64], sizes = [8, 32], strides = [1, 1]} : vector<8x96xf32> to vector<8x32xf32>
    %c0_13 = arith.constant 0 : index
    %c0_14 = arith.constant 0 : index
    %c0_15 = arith.constant 0 : index
    %18 = vector.load %arg7[%c0_13, %c0_14, %c0_15] : memref<1x8x32xf32, #tpu.memory_space<vmem>>, vector<1x8x32xf32>
    %19 = vector.shape_cast %18 : vector<1x8x32xf32> to vector<8x32xf32>
    %20 = vector.shape_cast %17 : vector<8x32xf32> to vector<1x8x32xf32>
    tpu.vector_store %arg7[%c0_13, %c0_14, %c0_15], %20 {strides = array<i32>} : memref<1x8x32xf32, #tpu.memory_space<vmem>>, vector<1x8x32xf32>,
    return
  }
  func.func @transform_0(%arg0: i32, %arg1: i32) -> (i32, i32, i32) {
    %c0_i32 = arith.constant 0 : i32
    %c0_i32_0 = arith.constant 0 : i32
    return %arg0, %arg1, %c0_i32 : i32, i32, i32
  }
  func.func @transform_1(%arg0: i32, %arg1: i32) -> (i32, i32) {
    %c0_i32 = arith.constant 0 : i32
    %c0_i32_0 = arith.constant 0 : i32
    %c0_i32_1 = arith.constant 0 : i32
    return %c0_i32, %c0_i32_0 : i32, i32
  }
  func.func @transform_2(%arg0: i32, %arg1: i32) -> (i32, i32) {
    %c0_i32 = arith.constant 0 : i32
    %c0_i32_0 = arith.constant 0 : i32
    %c0_i32_1 = arith.constant 0 : i32
    return %c0_i32, %c0_i32_0 : i32, i32
  }
  func.func @transform_3(%arg0: i32, %arg1: i32) -> (i32, i32, i32) {
    %c0_i32 = arith.constant 0 : i32
    %c0_i32_0 = arith.constant 0 : i32
    return %arg0, %arg1, %c0_i32 : i32, i32, i32
  }
  func.func @transform_4(%arg0: i32, %arg1: i32) -> (i32, i32, i32) {
    %c0_i32 = arith.constant 0 : i32
    %c0_i32_0 = arith.constant 0 : i32
    return %arg0, %arg1, %c0_i32 : i32, i32, i32
  }
  func.func @transform_5(%arg0: i32, %arg1: i32) -> (i32, i32, i32) {
    %c0_i32 = arith.constant 0 : i32
    %c0_i32_0 = arith.constant 0 : i32
    return %arg0, %arg1, %c0_i32 : i32, i32, i32
  }
}

</mosaic_0001>

<bundles_post_ra>
// kernel: tpu_custom_call.1
= control target key start
LH: loop header
LB: loop body
LE: loop exit
PB: predicated region body
PF: predicated region fallthrough
CT: control target
= control target key end

     0   :  { %s1198_s0 = inlined_call_operand.hbm [shape: f32[2,8,32], index: 0, kind: input, shape index: {}]   ;;  %s1199_s1 = inlined_call_operand.hbm [shape: f32[32,96], index: 1, kind: input, shape index: {}]   ;;  %s1200_s2 = inlined_call_operand.vmem [shape: f32[1,96], index: 2, kind: input, shape index: {}]   ;;  %s1201_s3 = inlined_call_operand.hbm [shape: f32[2,8,32], index: 3, kind: output, shape index: {0}]   ;;  %s1202_s4 = inlined_call_operand.hbm [shape: f32[2,8,32], index: 4, kind: output, shape index: {1}]   ;;  %s1203_s5 = inlined_call_operand.hbm [shape: f32[2,8,32], index: 5, kind: output, shape index: {2}]  }
   0x1   :  { %1207 = sst [smem:[#allocation16_spill]] %s1199_s1 }
   0x2   :  { %11 = vsyncpa [#allocation3], 0 }
   0x3   :  { %13 = vsyncpa [#allocation3 + $0x1], 0 }
   0x4   :  { %14 = vsyncpa [#allocation6], 0 }
   0x5   :  { %15 = vsyncpa [#allocation4], 0 }
   0x6   :  { %17 = vsyncpa [#allocation4 + $0x1], 0 }
   0x7   :  { %18 = vsyncpa [#allocation9], 0 }
   0x8   :  { %20 = vsyncpa [#allocation9 + $0x1], 0  ;;  %s962_s18 = smov 0   ;;  %s964_s19 = smov 0  }
   0x9   :  { %s966_s20 = smov 0   ;;  %s968_s21 = smov 0  }
   0xa   :  { %s970_s22 = smov 0   ;;  %s972_s23 = smov 0  }
   0xb LB: > { %s993_s24 = sadd.s32 4294967295, %s919_s23   ;;  %s1204_s25 = sadd.s32 4294967294, %s919_s23   ;;  %s919_s23 = sphi %s972_s23, %s26_s23   ;;  %s915_s22 = sphi %s970_s22, %s1228_s22   ;;  %s911_s21 = sphi %s968_s21, %s1227_s21   ;;  %s907_s20 = sphi %s966_s20, %s1226_s20   ;;  %s903_s19 = sphi %s964_s19, %s1225_s19   ;;  %s899_s18 = sphi %s962_s18, %s1224_s18  }
   0xc   : > { %p60_p0 = scmp.ne.s32.totalorder %s903_s19, %s899_s18  ;;  %p1206_p1 = scmp.eq.s32.totalorder %s993_s24, 0 }
   0xd   : > { %p134_p3 = scmp.eq.s32.totalorder %s1204_s25, 1  ;;  %p599_p5 = scmp.ge.s32.totalorder %s919_s23, 1 }
   0xe   : > { %p1004_p4 = por %p1206_p1, %p60_p0  ;;  %p197_p7 = scmp.lt.s32.totalorder %s919_s23, 3 }
   0xf   : > { %p1009_p6 = por %p134_p3, %p60_p0  ;;  %s921_s29 = smov [#allocation5]  }
  0x10   : > { %p1014_p8 = pnand %p599_p5, %p197_p7  ;;  %s209_s30 = sshll.u32 %s921_s29, 4  ;;  %s210_s30 = int_to_ptr.vmem [resolvable:$true] %s209_s30 }
  0x11   : > { %s1209_s27 = scalar_select %p1009_p6, 1, 0 }
  0x12   : > { %p648_p9 = pneg %p1014_p8  ;;  %s38_s7 = sadd.s32 1, %s915_s22 }
  0x13   : > { %s736_s8 = scalar_lea.vmem %s210_s30, 512  ;;  %p744_p5 = scmp.lt.s32.totalorder %s210_s30, %s210_s30 }
  0x14   : > { %p1023_p11 = pnand %p648_p9, %p1206_p1  ;;  %p737_p13 = scmp.ne.s32.totalorder %s210_s30, %s736_s8 }
  0x15   : > { %p745_p7 = scmp.lt.s32.totalorder %s736_s8, %s736_s8 }
  0x16   : > { %p727_p12 = pneg %p1023_p11 }
  0x17   : > { %p746_p2 = por %p745_p7, %p744_p5 }
  0x18   : > { %p739_p0 = pnand %p737_p13, %p727_p12 }
  0x1a   : > { %p740_p3 = pneg %p739_p0 }
  0x1c   : > { %p747_p6 = pnand %p746_p2, %p740_p3 }
  0x1e   : > { %750 = shalt.err (!%p747_p6)
}
  0x1f   : > { %s922_s9 = smov 128   ;;  %s923_s10 = smov 8  }
  0x20   : > { %s1212_s1 = sld [smem:[#allocation16_spill]]  ;;  %p40_p2 = scmp.ge.s32.totalorder %s38_s7, 2 }
  0x21   : > { %s47_s13 = sadd.s32 1, %s907_s20  ;;  %p54_p6 = scmp.ne.s32.totalorder %s907_s20, %s903_s19 }
  0x22   : > { %p55_p9 = scmp.eq.s32.totalorder %s919_s23, 0  ;;  %s1230_s7 = smov (%p40_p2, %s38_s7), 0 }
  0x23   : > { %1213 = sst [smem:[#allocation15_spill]] %s1230_s7  ;;  %p1215_p13 = scmp.eq.s32.totalorder %s993_s24, 1 }
  0x24   : > { %p1041_p12 = por %p55_p9, %p54_p6  ;;  %s42_s16 = ssub.s32 %s915_s22, %s1230_s7 }
  0x25   : > { %p1047_p0 = por %p1215_p13, %p54_p6  ;;  %p667_p3 = scmp.lt.s32.totalorder %s919_s23, 2 }
  0x26   : > { %651 = dma.hbm_to_vmem [thread:$0]  (!%p1023_p11), %s1212_s1, 512, %s210_s30, [#allocation6], %s922_s9, %s922_s9, %s923_s10  }
  0x27   : > { %p45_p11 = scmp.eq.s32.totalorder %s42_s16, 0  ;;  %s226_s17 = sand.u32 1, %s907_s20  }
  0x28   : > { %s602_s29 = sshll.u32 %s226_s17, 3  ;;  %s603_s6 = sshll.u32 %s915_s22, 7 }
  0x29   : > { %s1056_s30 = scalar_select %p45_p11, %s907_s20, %s47_s13  }
  0x2a   : > { %s236_s10 = scalar_lea.hbm %s1198_s0, %s603_s6  ;;  %s230_s11 = scalar_lea.vmem [#allocation2], %s602_s29 }
  0x2b   : > { %s238_s12 = sshll.u32 %s230_s11, 4  ;;  %p1064_p5 = pnand %p667_p3, %p1041_p12  ;;  %s239_s12 = int_to_ptr.vmem [resolvable:$true] %s238_s12 }
  0x2c   : > { %s227_s1 = scalar_lea.sflag [#allocation3], %s226_s17  ;;  %s764_s16 = scalar_lea.vmem %s239_s12, 128 }
  0x2d   : > { %p753_p7 = pneg %p1064_p5  ;;  %p765_p2 = scmp.ne.s32.totalorder %s239_s12, %s764_s16 }
  0x2e   : > { %s924_s13 = smov [#allocation2]  }
  0x2f   : > { %p767_p6 = pnand %p765_p2, %p753_p7  ;;  %s769_s7 = sshll.u32 %s924_s13, 4  ;;  %s770_s7 = int_to_ptr.vmem [resolvable:$false] %s769_s7 }
  0x30   : > { %s771_s6 = scalar_lea.vmem %s770_s7, 256  ;;  %p772_p13 = scmp.lt.s32.totalorder %s239_s12, %s770_s7 }
  0x31   : > { %p768_p9 = pneg %p767_p6  ;;  %p773_p11 = scmp.lt.s32.totalorder %s771_s6, %s764_s16 }
  0x33   : > { %p774_p10 = por %p773_p11, %p772_p13 }
  0x35   : > { %p775_p1 = pnand %p774_p10, %p768_p9 }
  0x37   : > { %778 = shalt.err (!%p775_p1)
}
  0x38   : > { %655 = dma.hbm_to_vmem [thread:$0]  (!%p1064_p5), %s236_s10, 128, %s239_s12, %s227_s1  }
  0x39   : > { %247 = sbr.rel (%p1014_p8) target bundleno = 420 (0x1a4), region = 32  ;;  %s1075_s14 = sand.u32 (!%p1014_p8), 1, %s903_s19  }
  0x3a   : > { %s1078_s17 = sshll.u32 (!%p1014_p8), %s1075_s14, 3  ;;  %s250_s7 = scalar_lea.sflag (!%p1014_p8), [#allocation3], %s1075_s14 }
  0x3b   : > { %s253_s29 = scalar_lea.vmem (!%p1014_p8), [#allocation2], %s1078_s17 }
  0x3e   : > { %882 = dma.done.wait (%p1004_p4), %s250_s7, 128  }
  0x3f   : > { %884 = vsyncadd (%p1004_p4), %s250_s7, 4294967168  ;;  %p1218_p1 = scmp.eq.s32.totalorder %s993_s24, 0 }
  0x41   : > { %886 = dma.done.wait (%p1218_p1), [#allocation6], 512   ;;  %p1219_p8 = pmov %p1218_p1 }
  0x42   : > { %v925_v0 = vmov 0.0   ;;  %vm926_vm0 = vmmov 0   ;;  %v298_v1 = vld [vmem:[#allocation5 + $0x18] sm:$0xff]  ;;  %v297_v2 = vld [vmem:[#allocation5 + $0x10] sm:$0xff]  ;;  %v296_v3 = vld [vmem:[#allocation5 + $0x8] sm:$0xff]  ;;  %vm306_vm1 = vcmask 261120  }
  0x43   : > { %888 = vsyncadd (%p1219_p8), [#allocation6], 4294966784  ;;  %625 = vmatprep.subr.mxu0 %v925_v0  ;;  %633 = vmatprep.mubr.msk.f32.mxu0 %vm926_vm0, %v925_v0  ;;  %v295_v4 = vld [vmem:[#allocation5] sm:$0xff]  ;;  %v294_v5 = vld [vmem:[%s253_s29] sm:$0xff]  ;;  %s1095_s26 = sshll.u32 %s911_s21, 7  ;;  %s279_s28 = scalar_lea.vmem [#allocation7], %s1078_s17 }
  0x44   : > { %626 = vmatpush3.msra.mxu0 %v298_v1  ;;  %v610_v6 = vld [vmem:[%s1200_s2] ss:$0 sm:$0xff]  ;;  %s416_s8 = sshll.u32 %s279_s28, 4  ;;  %s927_s9 = smov 96   ;;  %s417_s8 = int_to_ptr.vmem [resolvable:$true] %s416_s8 }
  0x45   : > { %627 = vmatprep.subr.mxu0 %v925_v0  ;;  %s414_s12 = scalar_lea.hbm %s1201_s3, %s1095_s26  ;;  %s392_s16 = scalar_lea.sflag [#allocation4], %s1075_s14 }
  0x46   : > { %628 = vmatpush3.msra.mxu0 %v297_v2  ;;  %s779_s13 = scalar_lea.vmem %s417_s8, 128  ;;  %s928_s21 = smov [#allocation7]  }
  0x47   : > { %629 = vmatprep.subr.mxu0 %v925_v0  ;;  %p780_p4 = scmp.ne.s32.totalorder %s417_s8, %s779_s13  ;;  %s783_s6 = sshll.u32 %s928_s21, 4  ;;  %s784_s6 = int_to_ptr.vmem [resolvable:$false] %s783_s6 }
  0x48   : > { %630 = vmatpush3.msra.mxu0 %v296_v3  ;;  %s785_s7 = scalar_lea.vmem %s784_s6, 256  ;;  %p786_p3 = scmp.lt.s32.totalorder %s417_s8, %s784_s6 }
  0x49   : > { %631 = vmatprep.subr.mxu0 %v925_v0  ;;  %p781_p10 = pnand %p780_p4, %p1047_p0  ;;  %p787_p5 = scmp.lt.s32.totalorder %s785_s7, %s779_s13 }
  0x4a   : > { %632 = vmatpush3.msra.mxu0 %v295_v4 }
  0x4b   : > { %634 = vmatmul.mubr.msk.f32.vlgmr.msra.gmra.mxu0 %vm306_vm1, %v294_v5  ;;  %p782_p12 = pneg %p781_p10  ;;  %p788_p7 = por %p787_p5, %p786_p3 }
  0x4d   : > { %p789_p2 = pnand %p788_p7, %p782_p12 }
 0x10b   : > { %v376_v7 = vpop.f32.mrf.mxu0 }
 0x10c   : > { %v377_v8 = vadd.f32 %v610_v6, %v376_v7 }
 0x10d   : > { %v635_v9 = vpop.f32.mrf.mxu0 }
 0x10e   : > { %v380_v10 = vmul.f32 0.35355338, %v377_v8  ;;  %383 = vrot.lane.b32.xlu0 %v377_v8, %s927_s9 }
 0x110   : > { %381 = vst.msk [vmem:[%s279_s28] sm:$0xff] %vm306_vm1, %v380_v10 }
 0x111   : > { %792 = shalt.err (!%p789_p2)
}
 0x112   : > { %s793_s29 = scalar_lea.hbm %s414_s12, 128  ;;  %s797_s25 = scalar_lea.hbm %s1201_s3, 256 }
 0x113   : > { %p794_p6 = scmp.ne.s32.totalorder %s414_s12, %s793_s29  ;;  %p798_p11 = scmp.lt.s32.totalorder %s414_s12, %s1201_s3 }
 0x114   : > { %p799_p1 = scmp.lt.s32.totalorder %s797_s25, %s793_s29 }
 0x115   : > { %p795_p9 = pnand %p794_p6, %p1047_p0 }
 0x116   : > { %p800_p8 = por %p799_p1, %p798_p11 }
 0x117   : > { %p796_p13 = pneg %p795_p9 }
 0x119   : > { %p801_p4 = pnand %p800_p8, %p796_p13 }
 0x11b   : > { %804 = shalt.err (!%p801_p4)
}
 0x11c   : > { %642 = dma.vmem_to_hbm [thread:$0]  (%p1047_p0), %s417_s8, 128, %s414_s12, %s392_s16  }
 0x11d   : > { %s929_s10 = smov 64   ;;  %s396_s11 = sand.u32 1, %s993_s24  }
 0x11e   : > { %387 = vrot.lane.b32.xlu0 %v377_v8, %s929_s10  ;;  %s286_s13 = scalar_lea.vmem [#allocation8], %s1078_s17  ;;  %s1122_s29 = scalar_lea.hbm %s1202_s4, %s1095_s26 }
 0x11f   : > { %s430_s21 = sshll.u32 %s286_s13, 4  ;;  %s293_s14 = scalar_lea.vmem [#allocation10], %s1078_s17  ;;  %s1124_s21 = int_to_ptr.vmem [resolvable:$true] %s430_s21 }
 0x120   : > { %s444_s1 = sshll.u32 %s293_s14, 4  ;;  %s1130_s8 = scalar_lea.sflag [#allocation9], %s396_s11  ;;  %s445_s1 = int_to_ptr.vmem [resolvable:$true] %s444_s1 }
 0x121   : > { %s805_s24 = scalar_lea.vmem %s1124_s21, 128  ;;  %s930_s12 = smov [#allocation8]  }
 0x122   : > { %p806_p10 = scmp.ne.s32.totalorder %s1124_s21, %s805_s24  ;;  %s809_s16 = sshll.u32 %s930_s12, 4  ;;  %s810_s16 = int_to_ptr.vmem [resolvable:$false] %s809_s16 }
 0x123   : > { %s811_s25 = scalar_lea.vmem %s810_s16, 256  ;;  %p812_p5 = scmp.lt.s32.totalorder %s1124_s21, %s810_s16 }
 0x124   : > { %p807_p12 = pnand %p806_p10, %p1047_p0  ;;  %p813_p7 = scmp.lt.s32.totalorder %s811_s25, %s805_s24 }
 0x126   : > { %p808_p3 = pneg %p807_p12  ;;  %p814_p2 = por %p813_p7, %p812_p5 }
 0x128   : > { %p815_p6 = pnand %p814_p2, %p808_p3 }
 0x180   : > { %v384_v11 = vpop.permute.xlu0 %383 }
 0x181   : > { %386 = vst.msk [vmem:[%s286_s13] sm:$0xff] %vm306_vm1, %v384_v11 }
 0x182   : > { %818 = shalt.err (!%p815_p6)
}
 0x183   : > { %s819_s28 = scalar_lea.hbm %s1122_s29, 128  ;;  %s823_s11 = scalar_lea.hbm %s1202_s4, 256 }
 0x184   : > { %p820_p9 = scmp.ne.s32.totalorder %s1122_s29, %s819_s28  ;;  %p824_p1 = scmp.lt.s32.totalorder %s1122_s29, %s1202_s4 }
 0x185   : > { %p825_p8 = scmp.lt.s32.totalorder %s823_s11, %s819_s28 }
 0x186   : > { %p821_p13 = pnand %p820_p9, %p1047_p0 }
 0x187   : > { %p826_p4 = por %p825_p8, %p824_p1 }
 0x188   : > { %p822_p11 = pneg %p821_p13 }
 0x18a   : > { %p827_p10 = pnand %p826_p4, %p822_p11 }
 0x18c   : > { %830 = shalt.err (!%p827_p10)
}
 0x18d   : > { %643 = dma.vmem_to_hbm [thread:$0]  (%p1047_p0), %s1124_s21, 128, %s1122_s29, %s1130_s8  }
 0x18e   : > { %s442_s12 = scalar_lea.hbm %s1203_s5, %s1095_s26  ;;  %s831_s16 = scalar_lea.vmem %s445_s1, 128 }
 0x18f   : > { %p832_p12 = scmp.ne.s32.totalorder %s445_s1, %s831_s16  ;;  %s931_s25 = smov [#allocation10]  }
 0x190   : > { %v388_v12 = vpop.permute.xlu0 %387  ;;  %s835_s28 = sshll.u32 %s931_s25, 4  ;;  %s836_s28 = int_to_ptr.vmem [resolvable:$false] %s835_s28 }
 0x191   : > { %390 = vst.msk [vmem:[%s293_s14] sm:$0xff] %vm306_vm1, %v388_v12  ;;  %p833_p3 = pnand %p832_p12, %p1047_p0  ;;  %s837_s9 = scalar_lea.vmem %s836_s28, 256 }
 0x192   : > { %p838_p7 = scmp.lt.s32.totalorder %s445_s1, %s836_s28  ;;  %p839_p2 = scmp.lt.s32.totalorder %s837_s9, %s831_s16 }
 0x193   : > { %p834_p5 = pneg %p833_p3 }
 0x194   : > { %p840_p6 = por %p839_p2, %p838_p7 }
 0x196   : > { %p841_p9 = pnand %p840_p6, %p834_p5 }
 0x198   : > { %844 = shalt.err (!%p841_p9)
}
 0x199   : > { %s845_s26 = scalar_lea.hbm %s442_s12, 128  ;;  %s849_s29 = scalar_lea.hbm %s1203_s5, 256 }
 0x19a   : > { %p846_p13 = scmp.ne.s32.totalorder %s442_s12, %s845_s26  ;;  %p850_p8 = scmp.lt.s32.totalorder %s442_s12, %s1203_s5 }
 0x19b   : > { %p851_p4 = scmp.lt.s32.totalorder %s849_s29, %s845_s26 }
 0x19c   : > { %p847_p11 = pnand %p846_p13, %p1047_p0 }
 0x19d   : > { %p852_p10 = por %p851_p4, %p850_p8 }
 0x19e   : > { %p848_p1 = pneg %p847_p11 }
 0x1a0   : > { %p853_p12 = pnand %p852_p10, %p848_p1 }
 0x1a2   : > { %856 = shalt.err (!%p853_p12)
}
 0x1a3   : > { %644 = dma.vmem_to_hbm [thread:$0]  (%p1047_p0), %s445_s1, 128, %s442_s12, %s1130_s8  }
 0x1a4 PF: > { %s456_s11 = sand.u32 1, %s899_s18   ;;  %p1220_p3 = scmp.ne.s32.totalorder %s1209_s27, 0 }
 0x1a5   : > { %p1221_p5 = scmp.ge.s32.totalorder %s919_s23, 2  ;;  %s457_s13 = scalar_lea.sflag [#allocation4], %s456_s11 }
 0x1a7   : > { %p657_p7 = pnand %p1221_p5, %p1220_p3 }
 0x1a9   : > { %p658_p2 = pneg %p657_p7 }
 0x1ab   : > { %890 = dma.done.wait (%p658_p2), %s457_s13, 128  }
 0x1ac   : > { %892 = vsyncadd (%p658_p2), %s457_s13, 4294967168  ;;  %s1222_s6 = sadd.s32 4294967294, %s919_s23  }
 0x1ad   : > { %s465_s7 = sand.u32 1, %s1222_s6  }
 0x1ae   : > { %s466_s24 = scalar_lea.sflag [#allocation9], %s465_s7 }
 0x1af   : > { %894 = dma.done.wait (%p658_p2), %s466_s24, 256  }
 0x1b0   : > { %896 = vsyncadd (%p658_p2), %s466_s24, 4294967040  ;;  %s26_s23 = sadd.s32 1, %s919_s23   ;;  %s1223_s27 = sld [smem:[#allocation15_spill]] }
 0x1b1   : > { %p23_p0 = scmp.ge.s32.totalorder %s26_s23, 4   ;;  %s1224_s18 = smov %s903_s19 }
 0x1b2   : > { %s1225_s19 = smov %s907_s20  ;;  %s1226_s20 = smov %s1056_s30 }
 0x1b3   : > { %s1227_s21 = smov %s915_s22  ;;  %25 = sbr.rel (!%p23_p0) target bundleno = 11 (0xb), region = 113 }
 0x1b6   : > { %s1228_s22 = smov %s1223_s27 }
 0x1b8   :  { %480 = vsyncpa [#allocation3], 1 }
 0x1b9   :  { %482 = vsyncpa [#allocation3 + $0x1], 1 }
 0x1ba   :  { %483 = vsyncpa [#allocation6], 1 }
 0x1bb   :  { %484 = vsyncpa [#allocation4], 1 }
 0x1bc   :  { %486 = vsyncpa [#allocation4 + $0x1], 1 }
 0x1bd   :  { %487 = vsyncpa [#allocation9], 1 }
 0x1be   :  { %489 = vsyncpa [#allocation9 + $0x1], 1 }

</bundles_post_ra>
